<compile_context>
chip_gen: v6e
topology: v6e:2x2x1
jax: 0.10.0
libtpu: 0.0.40
codegen_flags: <defaults>
</compile_context>

<pallas_src>
import math
from functools import partial

import jax
import jax.numpy as jnp
from jax.experimental import pallas as pl
from jax.experimental.pallas import tpu as pltpu

VMEM_LIMIT = 32 * 1024 * 1024  # explicit scoped-VMEM budget, safe on v5e/v6e/v7x


# ----------------------------------------------------------------------------
# helpers
# ----------------------------------------------------------------------------

def _pick_tile(dim, candidates):
    """Largest candidate tile that divides `dim`, else the full dim (always legal)."""
    for t in candidates:
        if t <= dim and dim % t == 0:
            return t
    return dim


# ----------------------------------------------------------------------------
# Fused encoder layer kernel: QKV -> per-head attention -> out-proj -> +res -> LN1
#                             -> W1+ReLU -> W2 -> +res -> LN2
# ----------------------------------------------------------------------------

def _encoder_layer_kernel(x_ref, wqkv_ref, bqkv_ref, wo_ref, bo_ref,
                          ln1g_ref, ln1b_ref, w1_ref, b1_ref, w2_ref, b2_ref,
                          ln2g_ref, ln2b_ref, mask_ref, o_ref, *, nhead, scale):
    x = x_ref[0]                                   # (S, E) bf16, one batch element
    xf = x.astype(jnp.float32)
    S, E = x.shape
    dh = E // nhead
    mask = mask_ref[...]                           # (S, S) additive causal mask (f32)

    # --- fused QKV projection: one lane-dense (S,E)@(E,3E) MXU matmul ---
    qkv = jnp.dot(x, wqkv_ref[...], preferred_element_type=jnp.float32) + bqkv_ref[...]
    q = (qkv[:, :E] * scale).astype(jnp.bfloat16)  # scale applies to bias too (PyTorch semantics)
    k = qkv[:, E:2 * E].astype(jnp.bfloat16)
    v = qkv[:, 2 * E:].astype(jnp.bfloat16)

    # --- per-head softmax attention: only q@k^T and p@v stay per-head ---
    heads = []
    for h in range(nhead):                         # static loop over heads
        sl = slice(h * dh, (h + 1) * dh)
        s = jax.lax.dot_general(q[:, sl], k[:, sl], (((1,), (1,)), ((), ())),
                                preferred_element_type=jnp.float32) + mask   # (S, S)
        m = jnp.max(s, axis=-1, keepdims=True)
        p = jnp.exp(s - m)
        p = p * pl.reciprocal(jnp.sum(p, axis=-1, keepdims=True), approx=True)
        heads.append(jnp.dot(p.astype(jnp.bfloat16), v[:, sl],
                             preferred_element_type=jnp.float32))            # (S, dh)
    ctx = jnp.concatenate(heads, axis=-1)          # (S, E) f32, heads packed lane-dense

    # --- fused out-projection + residual + LayerNorm1 (eps=1e-5, post-norm) ---
    attn = jnp.dot(ctx.astype(jnp.bfloat16), wo_ref[...],
                   preferred_element_type=jnp.float32) + bo_ref[...]
    z1 = xf + attn
    mean = jnp.mean(z1, axis=-1, keepdims=True)
    var = jnp.mean(jnp.square(z1 - mean), axis=-1, keepdims=True)
    z1 = (z1 - mean) * jax.lax.rsqrt(var + 1e-5) * ln1g_ref[...] + ln1b_ref[...]

    # --- feed-forward: W1 + ReLU -> W2 -> residual -> LayerNorm2 ---
    hdn = jnp.dot(z1.astype(jnp.bfloat16), w1_ref[...],
                  preferred_element_type=jnp.float32) + b1_ref[...]
    hdn = jnp.maximum(hdn, 0.0)
    y = jnp.dot(hdn.astype(jnp.bfloat16), w2_ref[...],
                preferred_element_type=jnp.float32) + b2_ref[...]
    z2 = z1 + y
    mean = jnp.mean(z2, axis=-1, keepdims=True)
    var = jnp.mean(jnp.square(z2 - mean), axis=-1, keepdims=True)
    out = (z2 - mean) * jax.lax.rsqrt(var + 1e-5) * ln2g_ref[...] + ln2b_ref[...]
    o_ref[0] = out.astype(o_ref.dtype)             # bf16 activations between kernels


def encoder_layer(x, layer, mask, nhead):
    N, S, E = x.shape
    Hid = layer["ff_w1"].shape[1]
    dh = E // nhead
    scale = 1.0 / math.sqrt(dh)

    def full(a):  # whole-array block, constant index_map (weights / biases / mask)
        return pl.BlockSpec(a.shape, lambda n: (0,) * a.ndim)

    flops = N * (2 * S * E * 3 * E            # QKV projection
                 + nhead * 2 * (2 * S * S * dh)  # scores + p@v
                 + 2 * S * E * E              # out projection
                 + 2 * 2 * S * E * Hid)       # FFN
    bytes_accessed = (2 * N * S * E * 2                                    # x in + out (bf16)
                      + (E * 3 * E + E * E + E * Hid + Hid * E) * 2        # bf16 weights
                      + (3 * E + E + Hid + 5 * E) * 4                      # f32 biases / LN params
                      + S * S * 4)                                         # mask

    return pl.pallas_call(
        partial(_encoder_layer_kernel, nhead=nhead, scale=scale),
        out_shape=jax.ShapeDtypeStruct((N, S, E), jnp.bfloat16),
        grid=(N,),
        in_specs=[
            pl.BlockSpec((1, S, E), lambda n: (n, 0, 0)),   # activations (per batch element)
            full(layer["wqkv"]), full(layer["bqkv"]),
            full(layer["wo"]), full(layer["bo"]),
            full(layer["ln1_g"]), full(layer["ln1_b"]),
            full(layer["ff_w1"]), full(layer["ff_b1"]),
            full(layer["ff_w2"]), full(layer["ff_b2"]),
            full(layer["ln2_g"]), full(layer["ln2_b"]),
            full(mask),
        ],
        out_specs=pl.BlockSpec((1, S, E), lambda n: (n, 0, 0)),
        compiler_params=pltpu.CompilerParams(
            dimension_semantics=("parallel",),
            vmem_limit_bytes=VMEM_LIMIT),
        cost_estimate=pl.CostEstimate(flops=flops,
                                      transcendentals=N * nhead * S * S,
                                      bytes_accessed=bytes_accessed),
    )(x, layer["wqkv"], layer["bqkv"], layer["wo"], layer["bo"],
      layer["ln1_g"], layer["ln1_b"], layer["ff_w1"], layer["ff_b1"],
      layer["ff_w2"], layer["ff_b2"], layer["ln2_g"], layer["ln2_b"], mask)


# ----------------------------------------------------------------------------
# Decoder projection: tiled matmul with f32 accumulator, lane-dense (padded) output
# ----------------------------------------------------------------------------

def _matmul_bias_kernel(x_ref, w_ref, b_ref, o_ref, acc_ref):
    @pl.when(pl.program_id(2) == 0)
    def _():
        acc_ref[...] = jnp.zeros_like(acc_ref)

    acc_ref[...] += jnp.dot(x_ref[...], w_ref[...], preferred_element_type=jnp.float32)

    @pl.when(pl.program_id(2) == pl.num_programs(2) - 1)
    def _():
        o_ref[...] = (acc_ref[...] + b_ref[...]).astype(o_ref.dtype)


def decoder_linear(x, w, b):
    # x: (M, K) bf16; w: (K, Npad) bf16 (Npad is a multiple of 128); b: (1, Npad) f32.
    M, K = x.shape
    Kw, Nout = w.shape
    assert K == Kw and Nout % 128 == 0
    # NOTE: on v6e/v7x prefer 256-multiples for tm/tn (2x256^2 MXU); 128 on v5e (4x128^2).
    tm = _pick_tile(M, (256, 128, 64, 32, 16, 8))
    tn = _pick_tile(Nout, (512, 256, 128))
    tk = _pick_tile(K, (512, 256, 128))
    grid = (M // tm, Nout // tn, K // tk)
    bytes_accessed = M * K * 2 + K * Nout * 2 + Nout * 4 + M * Nout * 4
    return pl.pallas_call(
        _matmul_bias_kernel,
        out_shape=jax.ShapeDtypeStruct((M, Nout), jnp.float32),
        grid=grid,
        in_specs=[
            pl.BlockSpec((tm, tk), lambda i, j, k: (i, k)),
            pl.BlockSpec((tk, tn), lambda i, j, k: (k, j)),
            pl.BlockSpec((1, tn), lambda i, j, k: (0, j)),
        ],
        out_specs=pl.BlockSpec((tm, tn), lambda i, j, k: (i, j)),
        scratch_shapes=[pltpu.VMEM((tm, tn), jnp.float32)],
        compiler_params=pltpu.CompilerParams(
            dimension_semantics=("parallel", "parallel", "arbitrary"),
            vmem_limit_bytes=VMEM_LIMIT),
        cost_estimate=pl.CostEstimate(flops=2 * M * K * Nout, transcendentals=0,
                                      bytes_accessed=bytes_accessed),
    )(x, w, b)


# ----------------------------------------------------------------------------
# Model glue (parameters, mask, positional encoding) in plain JAX
# ----------------------------------------------------------------------------

def make_positional_encoding(max_len, d_model):
    position = jnp.arange(max_len, dtype=jnp.float32)[:, None]
    div_term = jnp.exp(jnp.arange(0, d_model, 2, dtype=jnp.float32)
                       * (-math.log(10000.0) / d_model))
    pe = jnp.zeros((max_len, d_model), dtype=jnp.float32)
    pe = pe.at[:, 0::2].set(jnp.sin(position * div_term))
    pe = pe.at[:, 1::2].set(jnp.cos(position * div_term))
    return pe                                    # (max_len, d_model)


def generate_square_subsequent_mask(sz):
    allowed = jnp.tril(jnp.ones((sz, sz), dtype=jnp.float32)) == 1.0
    return jnp.where(allowed, 0.0, -jnp.inf).astype(jnp.float32)


def init_params(key, ntoken, ninp, nhead, nhid, nlayers, lane=128):
    bf = jnp.bfloat16
    ntoken_pad = ((ntoken + lane - 1) // lane) * lane    # lane-dense decoder output
    keys = jax.random.split(key, 2 + 4 * nlayers)
    dec_w = jax.random.uniform(keys[1], (ninp, ntoken), jnp.float32, -0.1, 0.1)
    dec_w = jnp.pad(dec_w, ((0, 0), (0, ntoken_pad - ntoken))).astype(bf)
    params = {
        "emb_w": jax.random.uniform(keys[0], (ntoken, ninp), jnp.float32, -0.1, 0.1),
        "dec_w": dec_w,
        "dec_b": jnp.zeros((1, ntoken_pad), jnp.float32),
        "layers": [],
    }
    for l in range(nlayers):
        k = keys[2 + 4 * l: 2 + 4 * (l + 1)]
        layer = {
            # packed, lane-dense weight layouts (no per-head split)
            "wqkv": (0.05 * jax.random.normal(k[0], (ninp, 3 * ninp), jnp.float32)).astype(bf),
            "bqkv": jnp.zeros((1, 3 * ninp), jnp.float32),
            "wo": (0.05 * jax.random.normal(k[1], (ninp, ninp), jnp.float32)).astype(bf),
            "bo": jnp.zeros((1, ninp), jnp.float32),
            "ff_w1": (0.05 * jax.random.normal(k[2], (ninp, nhid), jnp.float32)).astype(bf),
            "ff_b1": jnp.zeros((1, nhid), jnp.float32),
            "ff_w2": (0.05 * jax.random.normal(k[3], (nhid, ninp), jnp.float32)).astype(bf),
            "ff_b2": jnp.zeros((1, ninp), jnp.float32),
            "ln1_g": jnp.ones((1, ninp), jnp.float32),
            "ln1_b": jnp.zeros((1, ninp), jnp.float32),
            "ln2_g": jnp.ones((1, ninp), jnp.float32),
            "ln2_b": jnp.zeros((1, ninp), jnp.float32),
        }
        params["layers"].append(layer)
    return params


def transformer_forward(params, src, src_mask, pe, ninp, nhead, ntoken):
    # src: (S, N) int32 token ids; output: (S, N, ntoken), matching PyTorch batch_first=False.
    S, N = src.shape
    tok = src.T                                          # batch-major (N, S)
    # Embedding gather + *sqrt(ninp) + positional encoding: left to XLA (elementwise prologue;
    # a standalone pallas_call here was pure launch overhead). Dropout layers are eval-mode identity.
    x = jnp.take(params["emb_w"], tok, axis=0)           # (N, S, E)
    x = (x * math.sqrt(ninp) + pe[:S]).astype(jnp.bfloat16)
    for layer in params["layers"]:
        x = encoder_layer(x, layer, src_mask, nhead)     # one fused kernel per encoder layer
    logits = decoder_linear(x.reshape(N * S, ninp), params["dec_w"], params["dec_b"])
    logits = logits[:, :ntoken]                          # drop lane padding
    return logits.reshape(N, S, ntoken).transpose(1, 0, 2)   # (S, N, ntoken)


# ----------------------------------------------------------------------------
# Main
# ----------------------------------------------------------------------------

if __name__ == "__main__":
    ntoken, ninp, nhead, nhid, nlayers = 16, 32, 4, 64, 2
    S, N = 8, 2  # sequence length, batch size

    key = jax.random.PRNGKey(0)
    pkey, dkey = jax.random.split(key)
    params = init_params(pkey, ntoken, ninp, nhead, nhid, nlayers)
    pe = make_positional_encoding(64, ninp)

    src = jax.random.randint(dkey, (S, N), 0, ntoken, dtype=jnp.int32)
    src_mask = generate_square_subsequent_mask(S)

    fwd = jax.jit(partial(transformer_forward, ninp=ninp, nhead=nhead, ntoken=ntoken))
    out = fwd(params, src, src_mask, pe)
    out = jax.block_until_ready(out)
    assert out.shape == (S, N, ntoken)
    assert bool(jnp.all(jnp.isfinite(out)))
    print("KERNEL_OK")
</pallas_src>

<mosaic_0001>
module attributes {stable_mosaic.version = 11 : i64} {
  func.func @_matmul_bias_kernel(%arg0: i32, %arg1: i32, %arg2: i32, %arg3: memref<16x32xbf16, #tpu.memory_space<vmem>>, %arg4: memref<32x128xbf16, #tpu.memory_space<vmem>>, %arg5: memref<1x128xf32, #tpu.memory_space<vmem>>, %arg6: memref<16x128xf32, #tpu.memory_space<vmem>>, %arg7: memref<16x128xf32, #tpu.memory_space<vmem>>) attributes {dimension_semantics = [#tpu.dimension_semantics<parallel>, #tpu.dimension_semantics<parallel>, #tpu.dimension_semantics<arbitrary>], iteration_bounds = array<i64: 1, 1, 1>, scalar_prefetch = 0 : i64, scratch_operands = 1 : i64, tpu.core_type = #tpu.core_type<tc>, window_params = [{transform_indices = @transform_0, window_bounds = array<i64: 16, 32>}, {transform_indices = @transform_1, window_bounds = array<i64: 32, 128>}, {transform_indices = @transform_2, window_bounds = array<i64: 1, 128>}, {transform_indices = @transform_3, window_bounds = array<i64: 16, 128>}]} {
    %c0_i32 = arith.constant 0 : i32
    %0 = arith.cmpi eq, %arg2, %c0_i32 : i32
    %1 = arith.extui %0 : i1 to i32
    %c0_i32_0 = arith.constant 0 : i32
    %2 = arith.cmpi ne, %1, %c0_i32_0 : i32
    scf.if %2 {
      %cst_10 = arith.constant 0.000000e+00 : f32
      %12 = vector.broadcast %cst_10 : f32 to vector<16x128xf32>
      %c0_11 = arith.constant 0 : index
      %c0_12 = arith.constant 0 : index
      %13 = vector.load %arg7[%c0_11, %c0_12] : memref<16x128xf32, #tpu.memory_space<vmem>>, vector<16x128xf32>
      tpu.vector_store %arg7[%c0_11, %c0_12], %12 {strides = array<i32>} : memref<16x128xf32, #tpu.memory_space<vmem>>, vector<16x128xf32>,
    } else {
    }
    %c0 = arith.constant 0 : index
    %c0_1 = arith.constant 0 : index
    %3 = vector.load %arg7[%c0, %c0_1] : memref<16x128xf32, #tpu.memory_space<vmem>>, vector<16x128xf32>
    %c0_2 = arith.constant 0 : index
    %c0_3 = arith.constant 0 : index
    %4 = vector.load %arg3[%c0_2, %c0_3] : memref<16x32xbf16, #tpu.memory_space<vmem>>, vector<16x32xbf16>
    %c0_4 = arith.constant 0 : index
    %c0_5 = arith.constant 0 : index
    %5 = vector.load %arg4[%c0_4, %c0_5] : memref<32x128xbf16, #tpu.memory_space<vmem>>, vector<32x128xbf16>
    %cst = arith.constant dense<0.000000e+00> : vector<16x128xf32>
    %6 = tpu.matmul %4, %5, %cst {dimension_numbers = #tpu.dot_dimension_numbers<[1], [0], [0], [1], [0, 0, 1, 1], [], []>} : vector<16x32xbf16>, vector<32x128xbf16>, vector<16x128xf32> -> vector<16x128xf32>
    %7 = arith.addf %3, %6 : vector<16x128xf32>
    %c0_6 = arith.constant 0 : index
    %c0_7 = arith.constant 0 : index
    %8 = vector.load %arg7[%c0_6, %c0_7] : memref<16x128xf32, #tpu.memory_space<vmem>>, vector<16x128xf32>
    tpu.vector_store %arg7[%c0_6, %c0_7], %7 {strides = array<i32>} : memref<16x128xf32, #tpu.memory_space<vmem>>, vector<16x128xf32>,
    %c0_i32_8 = arith.constant 0 : i32
    %9 = arith.cmpi eq, %arg2, %c0_i32_8 : i32
    %10 = arith.extui %9 : i1 to i32
    %c0_i32_9 = arith.constant 0 : i32
    %11 = arith.cmpi ne, %10, %c0_i32_9 : i32
    scf.if %11 {
      %c0_10 = arith.constant 0 : index
      %c0_11 = arith.constant 0 : index
      %12 = vector.load %arg7[%c0_10, %c0_11] : memref<16x128xf32, #tpu.memory_space<vmem>>, vector<16x128xf32>
      %c0_12 = arith.constant 0 : index
      %c0_13 = arith.constant 0 : index
      %13 = vector.load %arg5[%c0_12, %c0_13] : memref<1x128xf32, #tpu.memory_space<vmem>>, vector<1x128xf32>
      %14 = vector.broadcast %13 : vector<1x128xf32> to vector<16x128xf32>
      %15 = arith.addf %12, %14 : vector<16x128xf32>
      %c0_14 = arith.constant 0 : index
      %c0_15 = arith.constant 0 : index
      %16 = vector.load %arg6[%c0_14, %c0_15] : memref<16x128xf32, #tpu.memory_space<vmem>>, vector<16x128xf32>
      tpu.vector_store %arg6[%c0_14, %c0_15], %15 {strides = array<i32>} : memref<16x128xf32, #tpu.memory_space<vmem>>, vector<16x128xf32>,
    } else {
    }
    return
  }
  func.func @transform_0(%arg0: i32, %arg1: i32, %arg2: i32) -> (i32, i32) {
    %c0_i32 = arith.constant 0 : i32
    return %arg0, %arg2 : i32, i32
  }
  func.func @transform_1(%arg0: i32, %arg1: i32, %arg2: i32) -> (i32, i32) {
    %c0_i32 = arith.constant 0 : i32
    return %arg2, %arg1 : i32, i32
  }
  func.func @transform_2(%arg0: i32, %arg1: i32, %arg2: i32) -> (i32, i32) {
    %c0_i32 = arith.constant 0 : i32
    %c0_i32_0 = arith.constant 0 : i32
    return %c0_i32, %arg1 : i32, i32
  }
  func.func @transform_3(%arg0: i32, %arg1: i32, %arg2: i32) -> (i32, i32) {
    %c0_i32 = arith.constant 0 : i32
    return %arg0, %arg1 : i32, i32
  }
}

module attributes {stable_mosaic.version = 11 : i64} {
  func.func @_encoder_layer_kernel(%arg0: i32, %arg1: memref<1x8x32xbf16, #tpu.memory_space<vmem>>, %arg2: memref<32x96xbf16, #tpu.memory_space<vmem>>, %arg3: memref<1x96xf32, #tpu.memory_space<vmem>>, %arg4: memref<32x32xbf16, #tpu.memory_space<vmem>>, %arg5: memref<1x32xf32, #tpu.memory_space<vmem>>, %arg6: memref<1x32xf32, #tpu.memory_space<vmem>>, %arg7: memref<1x32xf32, #tpu.memory_space<vmem>>, %arg8: memref<32x64xbf16, #tpu.memory_space<vmem>>, %arg9: memref<1x64xf32, #tpu.memory_space<vmem>>, %arg10: memref<64x32xbf16, #tpu.memory_space<vmem>>, %arg11: memref<1x32xf32, #tpu.memory_space<vmem>>, %arg12: memref<1x32xf32, #tpu.memory_space<vmem>>, %arg13: memref<1x32xf32, #tpu.memory_space<vmem>>, %arg14: memref<8x8xf32, #tpu.memory_space<vmem>>, %arg15: memref<1x8x32xbf16, #tpu.memory_space<vmem>>) attributes {dimension_semantics = [#tpu.dimension_semantics<parallel>], iteration_bounds = array<i64: 2>, scalar_prefetch = 0 : i64, scratch_operands = 0 : i64, tpu.core_type = #tpu.core_type<tc>, window_params = [{transform_indices = @transform_0, window_bounds = array<i64: 1, 8, 32>}, {pipeline_mode = #tpu.pipeline_mode<synchronous>, transform_indices = @transform_1, window_bounds = array<i64: 32, 96>}, {pipeline_mode = #tpu.pipeline_mode<synchronous>, transform_indices = @transform_2, window_bounds = array<i64: 1, 96>}, {pipeline_mode = #tpu.pipeline_mode<synchronous>, transform_indices = @transform_3, window_bounds = array<i64: 32, 32>}, {pipeline_mode = #tpu.pipeline_mode<synchronous>, transform_indices = @transform_4, window_bounds = array<i64: 1, 32>}, {pipeline_mode = #tpu.pipeline_mode<synchronous>, transform_indices = @transform_5, window_bounds = array<i64: 1, 32>}, {pipeline_mode = #tpu.pipeline_mode<synchronous>, transform_indices = @transform_6, window_bounds = array<i64: 1, 32>}, {pipeline_mode = #tpu.pipeline_mode<synchronous>, transform_indices = @transform_7, window_bounds = array<i64: 32, 64>}, {pipeline_mode = #tpu.pipeline_mode<synchronous>, transform_indices = @transform_8, window_bounds = array<i64: 1, 64>}, {pipeline_mode = #tpu.pipeline_mode<synchronous>, transform_indices = @transform_9, window_bounds = array<i64: 64, 32>}, {pipeline_mode = #tpu.pipeline_mode<synchronous>, transform_indices = @transform_10, window_bounds = array<i64: 1, 32>}, {pipeline_mode = #tpu.pipeline_mode<synchronous>, transform_indices = @transform_11, window_bounds = array<i64: 1, 32>}, {pipeline_mode = #tpu.pipeline_mode<synchronous>, transform_indices = @transform_12, window_bounds = array<i64: 1, 32>}, {pipeline_mode = #tpu.pipeline_mode<synchronous>, transform_indices = @transform_13, window_bounds = array<i64: 8, 8>}, {transform_indices = @transform_14, window_bounds = array<i64: 1, 8, 32>}]} {
    %c0 = arith.constant 0 : index
    %c0_0 = arith.constant 0 : index
    %c0_1 = arith.constant 0 : index
    %0 = vector.load %arg1[%c0, %c0_0, %c0_1] : memref<1x8x32xbf16, #tpu.memory_space<vmem>>, vector<1x8x32xbf16>
    %1 = vector.shape_cast %0 : vector<1x8x32xbf16> to vector<8x32xbf16>
    %2 = arith.extf %1 : vector<8x32xbf16> to vector<8x32xf32>
    %c0_2 = arith.constant 0 : index
    %c0_3 = arith.constant 0 : index
    %3 = vector.load %arg14[%c0_2, %c0_3] : memref<8x8xf32, #tpu.memory_space<vmem>>, vector<8x8xf32>
    %c0_4 = arith.constant 0 : index
    %c0_5 = arith.constant 0 : index
    %4 = vector.load %arg2[%c0_4, %c0_5] : memref<32x96xbf16, #tpu.memory_space<vmem>>, vector<32x96xbf16>
    %cst = arith.constant dense<0.000000e+00> : vector<8x96xf32>
    %5 = tpu.matmul %1, %4, %cst {dimension_numbers = #tpu.dot_dimension_numbers<[1], [0], [0], [1], [0, 0, 1, 1], [], []>} : vector<8x32xbf16>, vector<32x96xbf16>, vector<8x96xf32> -> vector<8x96xf32>
    %c0_6 = arith.constant 0 : index
    %c0_7 = arith.constant 0 : index
    %6 = vector.load %arg3[%c0_6, %c0_7] : memref<1x96xf32, #tpu.memory_space<vmem>>, vector<1x96xf32>
    %7 = vector.broadcast %6 : vector<1x96xf32> to vector<8x96xf32>
    %8 = arith.addf %5, %7 : vector<8x96xf32>
    %9 = vector.extract_strided_slice %8 {offsets = [0, 0], sizes = [8, 32], strides = [1, 1]} : vector<8x96xf32> to vector<8x32xf32>
    %cst_8 = arith.constant 0.353553385 : f32
    %10 = vector.broadcast %cst_8 : f32 to vector<8x32xf32>
    %11 = arith.mulf %9, %10 : vector<8x32xf32>
    %12 = arith.truncf %11 : vector<8x32xf32> to vector<8x32xbf16>
    %13 = vector.extract_strided_slice %8 {offsets = [0, 32], sizes = [8, 32], strides = [1, 1]} : vector<8x96xf32> to vector<8x32xf32>
    %14 = arith.truncf %13 : vector<8x32xf32> to vector<8x32xbf16>
    %15 = vector.extract_strided_slice %8 {offsets = [0, 64], sizes = [8, 32], strides = [1, 1]} : vector<8x96xf32> to vector<8x32xf32>
    %16 = arith.truncf %15 : vector<8x32xf32> to vector<8x32xbf16>
    %17 = vector.extract_strided_slice %12 {offsets = [0, 0], sizes = [8, 8], strides = [1, 1]} : vector<8x32xbf16> to vector<8x8xbf16>
    %18 = vector.extract_strided_slice %14 {offsets = [0, 0], sizes = [8, 8], strides = [1, 1]} : vector<8x32xbf16> to vector<8x8xbf16>
    %cst_9 = arith.constant dense<0.000000e+00> : vector<8x8xf32>
    %19 = tpu.matmul %17, %18, %cst_9 {dimension_numbers = #tpu.dot_dimension_numbers<[1], [1], [0], [0], [0, 0, 1, 0], [], []>} : vector<8x8xbf16>, vector<8x8xbf16>, vector<8x8xf32> -> vector<8x8xf32>
    %20 = arith.addf %19, %3 : vector<8x8xf32>
    %cst_10 = arith.constant dense<0xFF800000> : vector<8xf32>
    %21 = vector.multi_reduction <maximumf>, %20, %cst_10 [1] : vector<8x8xf32> to vector<8xf32>
    %22 = vector.shape_cast %21 : vector<8xf32> to vector<8x1xf32>
    %23 = vector.broadcast %22 : vector<8x1xf32> to vector<8x8xf32>
    %24 = arith.subf %20, %23 : vector<8x8xf32>
    %25 = math.exp %24 : vector<8x8xf32>
    %cst_11 = arith.constant dense<0.000000e+00> : vector<8xf32>
    %26 = vector.multi_reduction <add>, %25, %cst_11 [1] : vector<8x8xf32> to vector<8xf32>
    %27 = vector.shape_cast %26 : vector<8xf32> to vector<8x1xf32>
    %28 = tpu.reciprocal %27 {approx = true} : vector<8x1xf32> -> vector<8x1xf32>
    %29 = vector.broadcast %28 : vector<8x1xf32> to vector<8x8xf32>
    %30 = arith.mulf %25, %29 : vector<8x8xf32>
    %31 = arith.truncf %30 : vector<8x8xf32> to vector<8x8xbf16>
    %32 = vector.extract_strided_slice %16 {offsets = [0, 0], sizes = [8, 8], strides = [1, 1]} : vector<8x32xbf16> to vector<8x8xbf16>
    %cst_12 = arith.constant dense<0.000000e+00> : vector<8x8xf32>
    %33 = tpu.matmul %31, %32, %cst_12 {dimension_numbers = #tpu.dot_dimension_numbers<[1], [0], [0], [1], [0, 0, 1, 1], [], []>} : vector<8x8xbf16>, vector<8x8xbf16>, vector<8x8xf32> -> vector<8x8xf32>
    %34 = vector.extract_strided_slice %12 {offsets = [0, 8], sizes = [8, 8], strides = [1, 1]} : vector<8x32xbf16> to vector<8x8xbf16>
    %35 = vector.extract_strided_slice %14 {offsets = [0, 8], sizes = [8, 8], strides = [1, 1]} : vector<8x32xbf16> to vector<8x8xbf16>
    %cst_13 = arith.constant dense<0.000000e+00> : vector<8x8xf32>
    %36 = tpu.matmul %34, %35, %cst_13 {dimension_numbers = #tpu.dot_dimension_numbers<[1], [1], [0], [0], [0, 0, 1, 0], [], []>} : vector<8x8xbf16>, vector<8x8xbf16>, vector<8x8xf32> -> vector<8x8xf32>
    %37 = arith.addf %36, %3 : vector<8x8xf32>
    %cst_14 = arith.constant dense<0xFF800000> : vector<8xf32>
    %38 = vector.multi_reduction <maximumf>, %37, %cst_14 [1] : vector<8x8xf32> to vector<8xf32>
    %39 = vector.shape_cast %38 : vector<8xf32> to vector<8x1xf32>
    %40 = vector.broadcast %39 : vector<8x1xf32> to vector<8x8xf32>
    %41 = arith.subf %37, %40 : vector<8x8xf32>
    %42 = math.exp %41 : vector<8x8xf32>
    %cst_15 = arith.constant dense<0.000000e+00> : vector<8xf32>
    %43 = vector.multi_reduction <add>, %42, %cst_15 [1] : vector<8x8xf32> to vector<8xf32>
    %44 = vector.shape_cast %43 : vector<8xf32> to vector<8x1xf32>
    %45 = tpu.reciprocal %44 {approx = true} : vector<8x1xf32> -> vector<8x1xf32>
    %46 = vector.broadcast %45 : vector<8x1xf32> to vector<8x8xf32>
    %47 = arith.mulf %42, %46 : vector<8x8xf32>
    %48 = arith.truncf %47 : vector<8x8xf32> to vector<8x8xbf16>
    %49 = vector.extract_strided_slice %16 {offsets = [0, 8], sizes = [8, 8], strides = [1, 1]} : vector<8x32xbf16> to vector<8x8xbf16>
    %cst_16 = arith.constant dense<0.000000e+00> : vector<8x8xf32>
    %50 = tpu.matmul %48, %49, %cst_16 {dimension_numbers = #tpu.dot_dimension_numbers<[1], [0], [0], [1], [0, 0, 1, 1], [], []>} : vector<8x8xbf16>, vector<8x8xbf16>, vector<8x8xf32> -> vector<8x8xf32>
    %51 = vector.extract_strided_slice %12 {offsets = [0, 16], sizes = [8, 8], strides = [1, 1]} : vector<8x32xbf16> to vector<8x8xbf16>
    %52 = vector.extract_strided_slice %14 {offsets = [0, 16], sizes = [8, 8], strides = [1, 1]} : vector<8x32xbf16> to vector<8x8xbf16>
    %cst_17 = arith.constant dense<0.000000e+00> : vector<8x8xf32>
    %53 = tpu.matmul %51, %52, %cst_17 {dimension_numbers = #tpu.dot_dimension_numbers<[1], [1], [0], [0], [0, 0, 1, 0], [], []>} : vector<8x8xbf16>, vector<8x8xbf16>, vector<8x8xf32> -> vector<8x8xf32>
    %54 = arith.addf %53, %3 : vector<8x8xf32>
    %cst_18 = arith.constant dense<0xFF800000> : vector<8xf32>
    %55 = vector.multi_reduction <maximumf>, %54, %cst_18 [1] : vector<8x8xf32> to vector<8xf32>
    %56 = vector.shape_cast %55 : vector<8xf32> to vector<8x1xf32>
    %57 = vector.broadcast %56 : vector<8x1xf32> to vector<8x8xf32>
    %58 = arith.subf %54, %57 : vector<8x8xf32>
    %59 = math.exp %58 : vector<8x8xf32>
    %cst_19 = arith.constant dense<0.000000e+00> : vector<8xf32>
    %60 = vector.multi_reduction <add>, %59, %cst_19 [1] : vector<8x8xf32> to vector<8xf32>
    %61 = vector.shape_cast %60 : vector<8xf32> to vector<8x1xf32>
    %62 = tpu.reciprocal %61 {approx = true} : vector<8x1xf32> -> vector<8x1xf32>
    %63 = vector.broadcast %62 : vector<8x1xf32> to vector<8x8xf32>
    %64 = arith.mulf %59, %63 : vector<8x8xf32>
    %65 = arith.truncf %64 : vector<8x8xf32> to vector<8x8xbf16>
    %66 = vector.extract_strided_slice %16 {offsets = [0, 16], sizes = [8, 8], strides = [1, 1]} : vector<8x32xbf16> to vector<8x8xbf16>
    %cst_20 = arith.constant dense<0.000000e+00> : vector<8x8xf32>
    %67 = tpu.matmul %65, %66, %cst_20 {dimension_numbers = #tpu.dot_dimension_numbers<[1], [0], [0], [1], [0, 0, 1, 1], [], []>} : vector<8x8xbf16>, vector<8x8xbf16>, vector<8x8xf32> -> vector<8x8xf32>
    %68 = vector.extract_strided_slice %12 {offsets = [0, 24], sizes = [8, 8], strides = [1, 1]} : vector<8x32xbf16> to vector<8x8xbf16>
    %69 = vector.extract_strided_slice %14 {offsets = [0, 24], sizes = [8, 8], strides = [1, 1]} : vector<8x32xbf16> to vector<8x8xbf16>
    %cst_21 = arith.constant dense<0.000000e+00> : vector<8x8xf32>
    %70 = tpu.matmul %68, %69, %cst_21 {dimension_numbers = #tpu.dot_dimension_numbers<[1], [1], [0], [0], [0, 0, 1, 0], [], []>} : vector<8x8xbf16>, vector<8x8xbf16>, vector<8x8xf32> -> vector<8x8xf32>
    %71 = arith.addf %70, %3 : vector<8x8xf32>
    %cst_22 = arith.constant dense<0xFF800000> : vector<8xf32>
    %72 = vector.multi_reduction <maximumf>, %71, %cst_22 [1] : vector<8x8xf32> to vector<8xf32>
    %73 = vector.shape_cast %72 : vector<8xf32> to vector<8x1xf32>
    %74 = vector.broadcast %73 : vector<8x1xf32> to vector<8x8xf32>
    %75 = arith.subf %71, %74 : vector<8x8xf32>
    %76 = math.exp %75 : vector<8x8xf32>
    %cst_23 = arith.constant dense<0.000000e+00> : vector<8xf32>
    %77 = vector.multi_reduction <add>, %76, %cst_23 [1] : vector<8x8xf32> to vector<8xf32>
    %78 = vector.shape_cast %77 : vector<8xf32> to vector<8x1xf32>
    %79 = tpu.reciprocal %78 {approx = true} : vector<8x1xf32> -> vector<8x1xf32>
    %80 = vector.broadcast %79 : vector<8x1xf32> to vector<8x8xf32>
    %81 = arith.mulf %76, %80 : vector<8x8xf32>
    %82 = arith.truncf %81 : vector<8x8xf32> to vector<8x8xbf16>
    %83 = vector.extract_strided_slice %16 {offsets = [0, 24], sizes = [8, 8], strides = [1, 1]} : vector<8x32xbf16> to vector<8x8xbf16>
    %cst_24 = arith.constant dense<0.000000e+00> : vector<8x8xf32>
    %84 = tpu.matmul %82, %83, %cst_24 {dimension_numbers = #tpu.dot_dimension_numbers<[1], [0], [0], [1], [0, 0, 1, 1], [], []>} : vector<8x8xbf16>, vector<8x8xbf16>, vector<8x8xf32> -> vector<8x8xf32>
    %85 = tpu.concatenate %33, %50, %67, %84 in 1 : vector<8x8xf32>, vector<8x8xf32>, vector<8x8xf32>, vector<8x8xf32> -> vector<8x32xf32>
    %86 = arith.truncf %85 : vector<8x32xf32> to vector<8x32xbf16>
    %c0_25 = arith.constant 0 : index
    %c0_26 = arith.constant 0 : index
    %87 = vector.load %arg4[%c0_25, %c0_26] : memref<32x32xbf16, #tpu.memory_space<vmem>>, vector<32x32xbf16>
    %cst_27 = arith.constant dense<0.000000e+00> : vector<8x32xf32>
    %88 = tpu.matmul %86, %87, %cst_27 {dimension_numbers = #tpu.dot_dimension_numbers<[1], [0], [0], [1], [0, 0, 1, 1], [], []>} : vector<8x32xbf16>, vector<32x32xbf16>, vector<8x32xf32> -> vector<8x32xf32>
    %c0_28 = arith.constant 0 : index
    %c0_29 = arith.constant 0 : index
    %89 = vector.load %arg5[%c0_28, %c0_29] : memref<1x32xf32, #tpu.memory_space<vmem>>, vector<1x32xf32>
    %90 = vector.broadcast %89 : vector<1x32xf32> to vector<8x32xf32>
    %91 = arith.addf %88, %90 : vector<8x32xf32>
    %92 = arith.addf %2, %91 : vector<8x32xf32>
    %cst_30 = arith.constant dense<0.000000e+00> : vector<8xf32>
    %93 = vector.multi_reduction <add>, %92, %cst_30 [1] : vector<8x32xf32> to vector<8xf32>
    %94 = vector.shape_cast %93 : vector<8xf32> to vector<8x1xf32>
    %cst_31 = arith.constant 3.200000e+01 : f32
    %95 = vector.broadcast %cst_31 : f32 to vector<8x1xf32>
    %96 = arith.divf %94, %95 : vector<8x1xf32>
    %97 = vector.broadcast %96 : vector<8x1xf32> to vector<8x32xf32>
    %98 = arith.subf %92, %97 : vector<8x32xf32>
    %99 = arith.mulf %98, %98 : vector<8x32xf32>
    %cst_32 = arith.constant dense<0.000000e+00> : vector<8xf32>
    %100 = vector.multi_reduction <add>, %99, %cst_32 [1] : vector<8x32xf32> to vector<8xf32>
    %101 = vector.shape_cast %100 : vector<8xf32> to vector<8x1xf32>
    %cst_33 = arith.constant 3.200000e+01 : f32
    %102 = vector.broadcast %cst_33 : f32 to vector<8x1xf32>
    %103 = arith.divf %101, %102 : vector<8x1xf32>
    %104 = vector.broadcast %96 : vector<8x1xf32> to vector<8x32xf32>
    %105 = arith.subf %92, %104 : vector<8x32xf32>
    %cst_34 = arith.constant 9.99999974E-6 : f32
    %106 = vector.broadcast %cst_34 : f32 to vector<8x1xf32>
    %107 = arith.addf %103, %106 : vector<8x1xf32>
    %108 = math.rsqrt %107 : vector<8x1xf32>
    %109 = vector.broadcast %108 : vector<8x1xf32> to vector<8x32xf32>
    %110 = arith.mulf %105, %109 : vector<8x32xf32>
    %c0_35 = arith.constant 0 : index
    %c0_36 = arith.constant 0 : index
    %111 = vector.load %arg6[%c0_35, %c0_36] : memref<1x32xf32, #tpu.memory_space<vmem>>, vector<1x32xf32>
    %112 = vector.broadcast %111 : vector<1x32xf32> to vector<8x32xf32>
    %113 = arith.mulf %110, %112 : vector<8x32xf32>
    %c0_37 = arith.constant 0 : index
    %c0_38 = arith.constant 0 : index
    %114 = vector.load %arg7[%c0_37, %c0_38] : memref<1x32xf32, #tpu.memory_space<vmem>>, vector<1x32xf32>
    %115 = vector.broadcast %114 : vector<1x32xf32> to vector<8x32xf32>
    %116 = arith.addf %113, %115 : vector<8x32xf32>
    %117 = arith.truncf %116 : vector<8x32xf32> to vector<8x32xbf16>
    %c0_39 = arith.constant 0 : index
    %c0_40 = arith.constant 0 : index
    %118 = vector.load %arg8[%c0_39, %c0_40] : memref<32x64xbf16, #tpu.memory_space<vmem>>, vector<32x64xbf16>
    %cst_41 = arith.constant dense<0.000000e+00> : vector<8x64xf32>
    %119 = tpu.matmul %117, %118, %cst_41 {dimension_numbers = #tpu.dot_dimension_numbers<[1], [0], [0], [1], [0, 0, 1, 1], [], []>} : vector<8x32xbf16>, vector<32x64xbf16>, vector<8x64xf32> -> vector<8x64xf32>
    %c0_42 = arith.constant 0 : index
    %c0_43 = arith.constant 0 : index
    %120 = vector.load %arg9[%c0_42, %c0_43] : memref<1x64xf32, #tpu.memory_space<vmem>>, vector<1x64xf32>
    %121 = vector.broadcast %120 : vector<1x64xf32> to vector<8x64xf32>
    %122 = arith.addf %119, %121 : vector<8x64xf32>
    %cst_44 = arith.constant 0.000000e+00 : f32
    %123 = vector.broadcast %cst_44 : f32 to vector<8x64xf32>
    %124 = arith.maximumf %122, %123 : vector<8x64xf32>
    %125 = arith.truncf %124 : vector<8x64xf32> to vector<8x64xbf16>
    %c0_45 = arith.constant 0 : index
    %c0_46 = arith.constant 0 : index
    %126 = vector.load %arg10[%c0_45, %c0_46] : memref<64x32xbf16, #tpu.memory_space<vmem>>, vector<64x32xbf16>
    %cst_47 = arith.constant dense<0.000000e+00> : vector<8x32xf32>
    %127 = tpu.matmul %125, %126, %cst_47 {dimension_numbers = #tpu.dot_dimension_numbers<[1], [0], [0], [1], [0, 0, 1, 1], [], []>} : vector<8x64xbf16>, vector<64x32xbf16>, vector<8x32xf32> -> vector<8x32xf32>
    %c0_48 = arith.constant 0 : index
    %c0_49 = arith.constant 0 : index
    %128 = vector.load %arg11[%c0_48, %c0_49] : memref<1x32xf32, #tpu.memory_space<vmem>>, vector<1x32xf32>
    %129 = vector.broadcast %128 : vector<1x32xf32> to vector<8x32xf32>
    %130 = arith.addf %127, %129 : vector<8x32xf32>
    %131 = arith.addf %116, %130 : vector<8x32xf32>
    %cst_50 = arith.constant dense<0.000000e+00> : vector<8xf32>
    %132 = vector.multi_reduction <add>, %131, %cst_50 [1] : vector<8x32xf32> to vector<8xf32>
    %133 = vector.shape_cast %132 : vector<8xf32> to vector<8x1xf32>
    %cst_51 = arith.constant 3.200000e+01 : f32
    %134 = vector.broadcast %cst_51 : f32 to vector<8x1xf32>
    %135 = arith.divf %133, %134 : vector<8x1xf32>
    %136 = vector.broadcast %135 : vector<8x1xf32> to vector<8x32xf32>
    %137 = arith.subf %131, %136 : vector<8x32xf32>
    %138 = arith.mulf %137, %137 : vector<8x32xf32>
    %cst_52 = arith.constant dense<0.000000e+00> : vector<8xf32>
    %139 = vector.multi_reduction <add>, %138, %cst_52 [1] : vector<8x32xf32> to vector<8xf32>
    %140 = vector.shape_cast %139 : vector<8xf32> to vector<8x1xf32>
    %cst_53 = arith.constant 3.200000e+01 : f32
    %141 = vector.broadcast %cst_53 : f32 to vector<8x1xf32>
    %142 = arith.divf %140, %141 : vector<8x1xf32>
    %143 = vector.broadcast %135 : vector<8x1xf32> to vector<8x32xf32>
    %144 = arith.subf %131, %143 : vector<8x32xf32>
    %cst_54 = arith.constant 9.99999974E-6 : f32
    %145 = vector.broadcast %cst_54 : f32 to vector<8x1xf32>
    %146 = arith.addf %142, %145 : vector<8x1xf32>
    %147 = math.rsqrt %146 : vector<8x1xf32>
    %148 = vector.broadcast %147 : vector<8x1xf32> to vector<8x32xf32>
    %149 = arith.mulf %144, %148 : vector<8x32xf32>
    %c0_55 = arith.constant 0 : index
    %c0_56 = arith.constant 0 : index
    %150 = vector.load %arg12[%c0_55, %c0_56] : memref<1x32xf32, #tpu.memory_space<vmem>>, vector<1x32xf32>
    %151 = vector.broadcast %150 : vector<1x32xf32> to vector<8x32xf32>
    %152 = arith.mulf %149, %151 : vector<8x32xf32>
    %c0_57 = arith.constant 0 : index
    %c0_58 = arith.constant 0 : index
    %153 = vector.load %arg13[%c0_57, %c0_58] : memref<1x32xf32, #tpu.memory_space<vmem>>, vector<1x32xf32>
    %154 = vector.broadcast %153 : vector<1x32xf32> to vector<8x32xf32>
    %155 = arith.addf %152, %154 : vector<8x32xf32>
    %156 = arith.truncf %155 : vector<8x32xf32> to vector<8x32xbf16>
    %c0_59 = arith.constant 0 : index
    %c0_60 = arith.constant 0 : index
    %c0_61 = arith.constant 0 : index
    %157 = vector.load %arg15[%c0_59, %c0_60, %c0_61] : memref<1x8x32xbf16, #tpu.memory_space<vmem>>, vector<1x8x32xbf16>
    %158 = vector.shape_cast %157 : vector<1x8x32xbf16> to vector<8x32xbf16>
    %159 = vector.shape_cast %156 : vector<8x32xbf16> to vector<1x8x32xbf16>
    tpu.vector_store %arg15[%c0_59, %c0_60, %c0_61], %159 {strides = array<i32>} : memref<1x8x32xbf16, #tpu.memory_space<vmem>>, vector<1x8x32xbf16>,
    return
  }
  func.func @transform_0(%arg0: i32) -> (i32, i32, i32) {
    %c0_i32 = arith.constant 0 : i32
    %c0_i32_0 = arith.constant 0 : i32
    %c0_i32_1 = arith.constant 0 : i32
    return %arg0, %c0_i32, %c0_i32_0 : i32, i32, i32
  }
  func.func @transform_1(%arg0: i32) -> (i32, i32) {
    %c0_i32 = arith.constant 0 : i32
    %c0_i32_0 = arith.constant 0 : i32
    %c0_i32_1 = arith.constant 0 : i32
    return %c0_i32, %c0_i32_0 : i32, i32
  }
  func.func @transform_2(%arg0: i32) -> (i32, i32) {
    %c0_i32 = arith.constant 0 : i32
    %c0_i32_0 = arith.constant 0 : i32
    %c0_i32_1 = arith.constant 0 : i32
    return %c0_i32, %c0_i32_0 : i32, i32
  }
  func.func @transform_3(%arg0: i32) -> (i32, i32) {
    %c0_i32 = arith.constant 0 : i32
    %c0_i32_0 = arith.constant 0 : i32
    %c0_i32_1 = arith.constant 0 : i32
    return %c0_i32, %c0_i32_0 : i32, i32
  }
  func.func @transform_4(%arg0: i32) -> (i32, i32) {
    %c0_i32 = arith.constant 0 : i32
    %c0_i32_0 = arith.constant 0 : i32
    %c0_i32_1 = arith.constant 0 : i32
    return %c0_i32, %c0_i32_0 : i32, i32
  }
  func.func @transform_5(%arg0: i32) -> (i32, i32) {
    %c0_i32 = arith.constant 0 : i32
    %c0_i32_0 = arith.constant 0 : i32
    %c0_i32_1 = arith.constant 0 : i32
    return %c0_i32, %c0_i32_0 : i32, i32
  }
  func.func @transform_6(%arg0: i32) -> (i32, i32) {
    %c0_i32 = arith.constant 0 : i32
    %c0_i32_0 = arith.constant 0 : i32
    %c0_i32_1 = arith.constant 0 : i32
    return %c0_i32, %c0_i32_0 : i32, i32
  }
  func.func @transform_7(%arg0: i32) -> (i32, i32) {
    %c0_i32 = arith.constant 0 : i32
    %c0_i32_0 = arith.constant 0 : i32
    %c0_i32_1 = arith.constant 0 : i32
    return %c0_i32, %c0_i32_0 : i32, i32
  }
  func.func @transform_8(%arg0: i32) -> (i32, i32) {
    %c0_i32 = arith.constant 0 : i32
    %c0_i32_0 = arith.constant 0 : i32
    %c0_i32_1 = arith.constant 0 : i32
    return %c0_i32, %c0_i32_0 : i32, i32
  }
  func.func @transform_9(%arg0: i32) -> (i32, i32) {
    %c0_i32 = arith.constant 0 : i32
    %c0_i32_0 = arith.constant 0 : i32
    %c0_i32_1 = arith.constant 0 : i32
    return %c0_i32, %c0_i32_0 : i32, i32
  }
  func.func @transform_10(%arg0: i32) -> (i32, i32) {
    %c0_i32 = arith.constant 0 : i32
    %c0_i32_0 = arith.constant 0 : i32
    %c0_i32_1 = arith.constant 0 : i32
    return %c0_i32, %c0_i32_0 : i32, i32
  }
  func.func @transform_11(%arg0: i32) -> (i32, i32) {
    %c0_i32 = arith.constant 0 : i32
    %c0_i32_0 = arith.constant 0 : i32
    %c0_i32_1 = arith.constant 0 : i32
    return %c0_i32, %c0_i32_0 : i32, i32
  }
  func.func @transform_12(%arg0: i32) -> (i32, i32) {
    %c0_i32 = arith.constant 0 : i32
    %c0_i32_0 = arith.constant 0 : i32
    %c0_i32_1 = arith.constant 0 : i32
    return %c0_i32, %c0_i32_0 : i32, i32
  }
  func.func @transform_13(%arg0: i32) -> (i32, i32) {
    %c0_i32 = arith.constant 0 : i32
    %c0_i32_0 = arith.constant 0 : i32
    %c0_i32_1 = arith.constant 0 : i32
    return %c0_i32, %c0_i32_0 : i32, i32
  }
  func.func @transform_14(%arg0: i32) -> (i32, i32, i32) {
    %c0_i32 = arith.constant 0 : i32
    %c0_i32_0 = arith.constant 0 : i32
    %c0_i32_1 = arith.constant 0 : i32
    return %arg0, %c0_i32, %c0_i32_0 : i32, i32, i32
  }
}

</mosaic_0001>

<bundles_post_ra>
// kernel: transformer_forward.5
= control target key start
LH: loop header
LB: loop body
LE: loop exit
PB: predicated region body
PF: predicated region fallthrough
CT: control target
= control target key end

     0   :  { %v136_v0 = vmov 0.0   ;;  %vm137_vm0 = vmmov 0   ;;  %vm46_vm1 = vcmask 261120   ;;  %s176_s1 = inlined_call_operand.vmem [shape: bf16[32,128], index: 1, kind: input, shape index: {}]   ;;  %s177_s0 = inlined_call_operand.vmem [shape: bf16[16,32], index: 0, kind: input, shape index: {}]   ;;  %s178_s2 = inlined_call_operand.vmem [shape: f32[1,128], index: 2, kind: input, shape index: {}]   ;;  %s179_s3 = inlined_call_operand.vmem [shape: f32[16,128], index: 3, kind: output, shape index: {}]  }
   0x1   :  { %123 = vmatprep.subr.bf16.mxu0 %v136_v0  ;;  %v133_v1 = vld [vmem:[%s176_s1 + $0x8] sm:$0xff]   ;;  %127 = vmatprep.mubr.msk.bf16.mxu0 %vm137_vm0, %v136_v0  ;;  %v134_v2 = vld [vmem:[%s176_s1] sm:$0xff]  }
   0x2   :  { %124 = vmatpush3.bf16.msra.mxu0 %v133_v1  ;;  %v135_v3 = vld [vmem:[%s177_s0] sm:$0xff]  }
   0x3   :  { %125 = vmatprep.subr.bf16.mxu0 %v136_v0  ;;  %v119_v4 = vld [vmem:[%s178_s2] ss:$0 sm:$0xff] }
   0x6   :  { %126 = vmatpush3.bf16.msra.mxu0 %v134_v2 }
   0x9   :  { %128 = vmatmul.mubr.msk.bf16.vlgmr.msra.gmra.mxu0 %vm46_vm1, %v135_v3 }
  0xc9   :  { %v84_v5 = vpop.f32.mrf.mxu0 }
  0xca   :  { %v107_v6 = vadd.f32 %v119_v4, %v84_v5 }
  0xcb   :  { %v129_v7 = vpop.f32.mrf.mxu0 }
  0xcc   :  { %109 = vst [vmem:[%s179_s3] sm:$0xff] %v107_v6 }
  0xcd   :  { %v87_v8 = vpop.f32.mrf.mxu0 }
  0xce   :  { %v108_v9 = vadd.f32 %v119_v4, %v87_v8 }
  0xcf   :  { %v130_v10 = vpop.f32.mrf.mxu0 }
  0xd0   :  { %110 = vst [vmem:[%s179_s3 + $0x8] sm:$0xff] %v108_v9 }

// kernel: transformer_forward.3
= control target key start
LH: loop header
LB: loop body
LE: loop exit
PB: predicated region body
PF: predicated region fallthrough
CT: control target
= control target key end

     0   :  { %s1638_s29 = smov 0   ;;  %s1807_s0 = inlined_call_operand.vmem [shape: bf16[2,8,32], index: 0, kind: input, shape index: {}]   ;;  %s1808_s1 = inlined_call_operand.vmem [shape: bf16[32,96], index: 1, kind: input, shape index: {}]   ;;  %s1809_s2 = inlined_call_operand.vmem [shape: f32[1,96], index: 2, kind: input, shape index: {}]   ;;  %s1810_s3 = inlined_call_operand.vmem [shape: bf16[32,32], index: 3, kind: input, shape index: {}]   ;;  %s1811_s4 = inlined_call_operand.vmem [shape: f32[1,32], index: 4, kind: input, shape index: {}]   ;;  %s1812_s5 = inlined_call_operand.vmem [shape: f32[1,32], index: 5, kind: input, shape index: {}]   ;;  %s1813_s6 = inlined_call_operand.vmem [shape: f32[1,32], index: 6, kind: input, shape index: {}]   ;;  %s1814_s7 = inlined_call_operand.vmem [shape: bf16[32,64], index: 7, kind: input, shape index: {}]   ;;  %s1815_s8 = inlined_call_operand.vmem [shape: f32[1,64], index: 8, kind: input, shape index: {}]   ;;  %s1816_s9 = inlined_call_operand.vmem [shape: bf16[64,32], index: 9, kind: input, shape index: {}]   ;;  %s1817_s10 = inlined_call_operand.vmem [shape: f32[1,32], index: 10, kind: input, shape index: {}]   ;;  %s1818_s11 = inlined_call_operand.vmem [shape: f32[1,32], index: 11, kind: input, shape index: {}]   ;;  %s1819_s12 = inlined_call_operand.vmem [shape: f32[1,32], index: 12, kind: input, shape index: {}]   ;;  %s1820_s13 = inlined_call_operand.vmem [shape: f32[8,8], index: 13, kind: input, shape index: {}]   ;;  %s1821_s14 = inlined_call_operand.vmem [shape: bf16[2,8,32], index: 14, kind: output, shape index: {}]  }
   0x1 LB: > { %s1332_s30 = sadd.s32 4294967295, %s1545_s29   ;;  %p1336_p0 = scmp.ge.s32.totalorder %s1545_s29, 1  ;;  %s1545_s29 = sphi %s1638_s29, %s24_s29  }
   0x2   : > { %p411_p1 = scmp.lt.s32.totalorder %s1545_s29, 3 }
   0x4   : > { %p412_p2 = pnand %p1336_p0, %p411_p1 }
   0x5   : > { %p455_p3 = scmp.lt.s32.totalorder (!%p412_p2), %s1332_s30, 1  ;;  %s1549_s25 = smov (!%p412_p2), 96  }
   0x6   : > { %415 = sbr.rel (%p412_p2) target bundleno = 2435 (0x983), region = 76  ;;  %s1550_s26 = smov (!%p412_p2), 120  }
   0x7   : > { %s1551_s27 = smov (!%p412_p2), 88   ;;  %s1552_s28 = smov (!%p412_p2), 80  }
   0x8   : > { %s1553_s15 = smov (!%p412_p2), 112   ;;  %s1554_s16 = smov (!%p412_p2), 72  }
   0x9   : > { %s1555_s17 = smov (!%p412_p2), 104   ;;  %s1556_s21 = smov (!%p412_p2), 56  }
   0xa   : > { %s1558_s23 = smov (!%p412_p2), 40   ;;  %s1559_s24 = smov (!%p412_p2), 48  }
   0xb   : > { %v1509_v0 = vld [vmem:[%s1808_s1 + $0x8] sm:$0xff]   ;;  %v1547_v1 = vmov 0.0   ;;  %v1510_v2 = vld [vmem:[%s1808_s1] sm:$0xff]   ;;  %vm1548_vm0 = vmmov 0   ;;  %s1823_s30 = smov (!%p455_p3, %s1332_s30), 1  ;;  %vm490_vm1 = vcmask 261120  }
   0xc   : > { %1401 = vmatprep.subr.bf16.mxu0 %v1547_v1  ;;  %1409 = vmatprep.subr.bf16.mxu1 %v1547_v1  ;;  %s1337_s19 = sshll.u32 %s1823_s30, 2  ;;  %v1339_v4 = vld [vmem:[%s1809_s2] ss:$0 sm:$0xff]  ;;  %vm540_vm2 = vcmask 64512   ;;  %vm604_vm3 = vcmask 1043456   ;;  %vm992_vm4 = vcmask 130048  }
   0xd   : > { %1402 = vmatpush3.bf16.msra.mxu0 %v1509_v0  ;;  %1405 = vmatprep.mubr.msk.bf16.mxu0 %vm1548_vm0, %v1547_v1  ;;  %s458_s22 = scalar_lea.vmem %s1807_s0, %s1337_s19  ;;  %v466_v24 = vld [vmem:[%s1820_s13] sm:$0xff]  ;;  %vm994_vm5 = vcmask 195584   ;;  %vm1202_vm6 = vcmask 523264   ;;  %vm1277_vm7 = vcmask 257024  }
   0xe   : > { %1403 = vmatprep.subr.bf16.mxu0 %v1547_v1  ;;  %1411 = vmatprep.mubr.msk.bf16.mxu1 %vm1548_vm0, %v1547_v1  ;;  %v1668_v3 = vld [vmem:[%s458_s22] sm:$0xf]  ;;  %s1557_s22 = smov 64  }
  0x11   : > { %1404 = vmatpush3.bf16.msra.mxu0 %v1510_v2 }
  0x12   : > { %1415 = vmatprep.subr.bf16.mxu0 %v1547_v1 }
  0x14   : > { %1406 = vmatmul.mubr.msk.bf16.vlgmr.msra.gmra.mxu0 %vm490_vm1, %v1668_v3 }
  0x15   : > { %1417 = vmatprep.mubr.msk.bf16.mxu0 %vm1548_vm0, %v1547_v1 }
  0xd4   : > { %v528_v5 = vpop.f32.mrf.mxu0 }
  0xd5   : > { %v529_v6 = vadd.f32 %v1339_v4, %v528_v5 }
  0xd6   : > { %v1407_v7 = vpop.f32.mrf.mxu0 }
  0xd7   : > { %v534_v8 = vmul.f32 0.35355338, %v529_v6  ;;  %v1677_v9 = vpack.c.bf16 %v529_v6, %v529_v6 }
  0xd8   : > { %v531_v10 = vpop.f32.mrf.mxu0 }
  0xd9   : > { %v535_v11 = vpack.c.bf16 %v534_v8, %v534_v8  ;;  %538 = vrot.lane.b32.xlu0 %v1677_v9, %s1549_s25  ;;  %s1560_s25 = smov 8  }
  0xda   : > { %v1408_v12 = vpop.f32.mrf.mxu0 }
  0xdb   : > { %649 = vrot.lane.b32.xlu1 %v535_v11, %s1550_s26 }
  0xdd   : > { %651 = vrot.lane.b32.xlu0 %v1677_v9, %s1551_s27 }
  0xdf   : > { %761 = vrot.lane.b32.xlu1 %v1677_v9, %s1552_s28 }
  0xe1   : > { %759 = vrot.lane.b32.xlu0 %v535_v11, %s1553_s15 }
  0xe3   : > { %871 = vrot.lane.b32.xlu1 %v1677_v9, %s1554_s16  ;;  %s1561_s16 = smov 16  }
  0xe5   : > { %869 = vrot.lane.b32.xlu0 %v535_v11, %s1555_s17  ;;  %s1562_s17 = smov 24  }
 0x14b   : > { %v539_v13 = vpop.permute.xlu0 %538 }
 0x14c   : > { %v545_v14 = vsel %vm540_vm2, %v539_v13, 0 }
 0x14d   : > { %1410 = vmatpush3.bf16.xpose.msra.mxu1 %v545_v14  ;;  %v650_v16 = vpop.permute.xlu1 %649 }
 0x14e   : > { %1421 = vmatprep.subr.bf16.mxu1 %v1547_v1 }
 0x14f   : > { %v652_v15 = vpop.permute.xlu0 %651 }
 0x150   : > { %v657_v17 = vsel %vm540_vm2, %v652_v15, 0 }
 0x151   : > { %v762_v18 = vpop.permute.xlu1 %761 }
 0x152   : > { %v767_v19 = vsel %vm540_vm2, %v762_v18, 0 }
 0x153   : > { %v760_v21 = vpop.permute.xlu0 %759 }
 0x154   : > { %1412 = vmatmul.mubr.msk.bf16.vlgmr.msra.gmra.mxu1 %vm540_vm2, %v535_v11 }
 0x155   : > { %1422 = vmatpush3.bf16.xpose.msra.mxu1 %v657_v17  ;;  %1423 = vmatprep.mubr.msk.bf16.mxu1 %vm1548_vm0, %v1547_v1  ;;  %v872_v20 = vpop.permute.xlu1 %871 }
 0x156   : > { %1433 = vmatprep.subr.bf16.mxu1 %v1547_v1  ;;  %v877_v22 = vsel %vm540_vm2, %v872_v20, 0 }
 0x157   : > { %v870_v23 = vpop.permute.xlu0 %869 }
 0x15c   : > { %1424 = vmatmul.mubr.msk.bf16.vlgmr.msra.gmra.mxu1 %vm540_vm2, %v650_v16 }
 0x15d   : > { %1434 = vmatpush3.bf16.xpose.msra.mxu1 %v767_v19  ;;  %1435 = vmatprep.mubr.msk.bf16.mxu1 %vm1548_vm0, %v1547_v1 }
 0x15e   : > { %1445 = vmatprep.subr.bf16.mxu1 %v1547_v1 }
 0x164   : > { %1436 = vmatmul.mubr.msk.bf16.vlgmr.msra.gmra.mxu1 %vm540_vm2, %v760_v21 }
 0x165   : > { %1446 = vmatpush3.bf16.xpose.msra.mxu1 %v877_v22  ;;  %1447 = vmatprep.mubr.msk.bf16.mxu1 %vm1548_vm0, %v1547_v1 }
 0x166   : > { %1457 = vmatprep.subr.bf16.mxu1 %v1547_v1 }
 0x16c   : > { %1448 = vmatmul.mubr.msk.bf16.vlgmr.msra.gmra.mxu1 %vm540_vm2, %v870_v23 }
 0x16d   : > { %1461 = vmatprep.mubr.msk.bf16.mxu1 %vm1548_vm0, %v1547_v1 }
 0x214   : > { %v581_v25 = vpop.f32.mrf.mxu1 }
 0x215   : > { %v582_v26 = vadd.f32 %v581_v25, %v466_v24 }
 0x216   : > { %v1413_v27 = vpop.f32.mrf.mxu1 }
 0x217   : > { %v587_v28 = vsel %vm540_vm2, %v582_v26, -inf }
 0x218   : > { %588 = vmax.xlane.f32.xlu1 %v587_v28  ;;  %v584_v29 = vpop.f32.mrf.mxu1 }
 0x21a   : > { %v1414_v30 = vpop.f32.mrf.mxu1 }
 0x21c   : > { %v693_v31 = vpop.f32.mrf.mxu1 }
 0x21d   : > { %v694_v32 = vadd.f32 %v693_v31, %v466_v24 }
 0x21e   : > { %v1425_v33 = vpop.f32.mrf.mxu1 }
 0x21f   : > { %v699_v34 = vsel %vm540_vm2, %v694_v32, -inf }
 0x220   : > { %700 = vmax.xlane.f32.xlu0 %v699_v34  ;;  %v696_v35 = vpop.f32.mrf.mxu1 }
 0x222   : > { %v1426_v36 = vpop.f32.mrf.mxu1 }
 0x224   : > { %v803_v37 = vpop.f32.mrf.mxu1 }
 0x225   : > { %v804_v38 = vadd.f32 %v803_v37, %v466_v24 }
 0x226   : > { %v1437_v39 = vpop.f32.mrf.mxu1 }
 0x227   : > { %v809_v40 = vsel %vm540_vm2, %v804_v38, -inf  ;;  %v1511_v39 = vld [vmem:[%s1810_s3 + $0x8] sm:$0xff]  }
 0x228   : > { %810 = vmax.xlane.f32.xlu0 %v809_v40  ;;  %v806_v41 = vpop.f32.mrf.mxu1  ;;  %1458 = vmatpush3.bf16.msra.mxu1 %v1511_v39  ;;  %v1512_v40 = vld [vmem:[%s1810_s3] sm:$0xff]  }
 0x229   : > { %1459 = vmatprep.subr.bf16.mxu1 %v1547_v1 }
 0x22a   : > { %v1438_v42 = vpop.f32.mrf.mxu1 }
 0x22c   : > { %v913_v43 = vpop.f32.mrf.mxu1  ;;  %1460 = vmatpush3.bf16.msra.mxu1 %v1512_v40 }
 0x22d   : > { %v914_v44 = vadd.f32 %v913_v43, %v466_v24  ;;  %1473 = vmatprep.subr.bf16.mxu1 %v1547_v1 }
 0x22e   : > { %v1449_v45 = vpop.f32.mrf.mxu1 }
 0x22f   : > { %v919_v46 = vsel %vm540_vm2, %v914_v44, -inf }
 0x230   : > { %920 = vmax.xlane.f32.xlu1 %v919_v46  ;;  %v916_v47 = vpop.f32.mrf.mxu1 }
 0x232   : > { %v1450_v48 = vpop.f32.mrf.mxu1 }
 0x2a1   : > { %v589_v49 = vpop.xlane.xlu1 %588 }
 0x2a2   : > { %v590_v50 = vsub.f32 %v582_v26, %v589_v49 }
 0x2a4   : > { %v591_v51 = vmul.f32 1.442695, %v590_v50 }
 0x2a6   : > { %1519 = vpow2.f32 %v591_v51 }
 0x2a9   : > { %v701_v52 = vpop.xlane.xlu0 %700 }
 0x2aa   : > { %v702_v53 = vsub.f32 %v694_v32, %v701_v52 }
 0x2ac   : > { %v703_v54 = vmul.f32 1.442695, %v702_v53 }
 0x2ae   : > { %1521 = vpow2.f32 %v703_v54 }
 0x2b1   : > { %v811_v55 = vpop.xlane.xlu0 %810 }
 0x2b2   : > { %v812_v56 = vsub.f32 %v804_v38, %v811_v55 }
 0x2b3   : > { %v1520_v57 = vpop.eup %1519 }
 0x2b4   : > { %v813_v58 = vmul.f32 1.442695, %v812_v56  ;;  %v593_v59 = vsel %vm540_vm2, %v1520_v57, 0.0  ;;  %v1351_v56 = vld [vmem:[%s1811_s4] ss:$0 sm:$0xff] }
 0x2b5   : > { %594 = vadd.xlane.f32.xlu0 %v593_v59 }
 0x2b6   : > { %1523 = vpow2.f32 %v813_v58 }
 0x2b9   : > { %v921_v0 = vpop.xlane.xlu1 %920 }
 0x2ba   : > { %v922_v2 = vsub.f32 %v914_v44, %v921_v0 }
 0x2bb   : > { %v1522_v60 = vpop.eup %1521 }
 0x2bc   : > { %v705_v61 = vsel %vm540_vm2, %v1522_v60, 0.0  ;;  %v923_v4 = vmul.f32 1.442695, %v922_v2 }
 0x2bd   : > { %706 = vadd.xlane.f32.xlu1 %v705_v61 }
 0x2be   : > { %1525 = vpow2.f32 %v923_v4 }
 0x2c3   : > { %v1524_v62 = vpop.eup %1523 }
 0x2c4   : > { %v815_v63 = vsel %vm540_vm2, %v1524_v62, 0.0 }
 0x2c5   : > { %816 = vadd.xlane.f32.xlu0 %v815_v63 }
 0x2cb   : > { %v1526_v5 = vpop.eup %1525 }
 0x2cc   : > { %v925_v6 = vsel %vm540_vm2, %v1526_v5, 0.0 }
 0x2ce   : > { %711 = vrot.lane.b32.xlu1 %v1677_v9, %s1556_s21  ;;  %s462_s21 = scalar_lea.vmem %s1821_s14, %s1337_s19 }
 0x2db   : > { %599 = vrot.lane.b32.xlu0 %v1677_v9, %s1557_s22 }
 0x2df   : > { %931 = vrot.lane.b32.xlu0 %v1677_v9, %s1558_s23 }
 0x2f2   : > { %926 = vadd.xlane.f32.xlu1 %v925_v6 }
 0x303   : > { %821 = vrot.lane.b32.xlu1 %v1677_v9, %s1559_s24 }
 0x33e   : > { %v595_v7 = vpop.xlane.xlu0 %594 }
 0x33f   : > { %1527 = vrcp.f32 %v595_v7 }
 0x346   : > { %v707_v8 = vpop.xlane.xlu1 %706 }
 0x347   : > { %1529 = vrcp.f32 %v707_v8  ;;  %v1514_v8 = vld [vmem:[%s1814_s7] sm:$0xff]  }
 0x34a   : > { %v712_v15 = vpop.permute.xlu1 %711 }
 0x34b   : > { %v717_v18 = vsel %vm604_vm3, %v712_v15, 0 }
 0x34c   : > { %v1528_v10 = vpop.eup %1527 }
 0x34d   : > { %v597_v12 = vmul.f32 %v1528_v10, %v1520_v57  ;;  %v465_v57 = vunpack.c.l.bf16 %v1668_v3  ;;  %v1513_v3 = vld [vmem:[%s1814_s7 + $0x8] sm:$0xff]   ;;  %v1515_v10 = vld [vmem:[%s1816_s9 + $0x18] sm:$0xff]  }
 0x34e   : > { %v817_v11 = vpop.xlane.xlu0 %816 }
 0x34f   : > { %v598_v16 = vpack.c.bf16 %v597_v12, %v597_v12  ;;  %1531 = vrcp.f32 %v817_v11  ;;  %v1516_v11 = vld [vmem:[%s1816_s9 + $0x10] sm:$0xff]  }
 0x352   : > { %v600_v13 = vpop.permute.xlu0 %599 }
 0x353   : > { %v606_v14 = vsel %vm604_vm3, %v600_v13, 0 }
 0x354   : > { %1416 = vmatpush3.bf16.msra.mxu0 %v606_v14  ;;  %v1530_v17 = vpop.eup %1529 }
 0x355   : > { %1427 = vmatprep.subr.bf16.mxu0 %v1547_v1  ;;  %v709_v9 = vmul.f32 %v1530_v17, %v1522_v60 }
 0x356   : > { %v932_v25 = vpop.permute.xlu0 %931 }
 0x357   : > { %1418 = vmatmul.mubr.msk.bf16.vlgmr.msra.gmra.mxu0 %vm540_vm2, %v598_v16  ;;  %v710_v19 = vpack.c.bf16 %v709_v9, %v709_v9  ;;  %v937_v27 = vsel %vm604_vm3, %v932_v25, 0  ;;  %v1355_v16 = vld [vmem:[%s1812_s5] ss:$0 sm:$0xff] }
 0x358   : > { %1428 = vmatpush3.bf16.msra.mxu0 %v717_v18  ;;  %1429 = vmatprep.mubr.msk.bf16.mxu0 %vm1548_vm0, %v1547_v1  ;;  %v1356_v18 = vld [vmem:[%s1813_s6] ss:$0 sm:$0xff] }
 0x359   : > { %1439 = vmatprep.subr.bf16.mxu0 %v1547_v1 }
 0x35c   : > { %v1532_v20 = vpop.eup %1531 }
 0x35d   : > { %v819_v22 = vmul.f32 %v1532_v20, %v1524_v62 }
 0x35f   : > { %1430 = vmatmul.mubr.msk.bf16.vlgmr.msra.gmra.mxu0 %vm540_vm2, %v710_v19  ;;  %v820_v26 = vpack.c.bf16 %v819_v22, %v819_v22  ;;  %v1518_v22 = vld [vmem:[%s1816_s9] sm:$0xff]  }
 0x360   : > { %1441 = vmatprep.mubr.msk.bf16.mxu0 %vm1548_vm0, %v1547_v1 }
 0x37b   : > { %v927_v21 = vpop.xlane.xlu1 %926 }
 0x37c   : > { %1533 = vrcp.f32 %v927_v21  ;;  %v1517_v21 = vld [vmem:[%s1816_s9 + $0x8] sm:$0xff]  }
 0x37f   : > { %v822_v23 = vpop.permute.xlu1 %821 }
 0x380   : > { %v827_v24 = vsel %vm604_vm3, %v822_v23, 0  ;;  %v1357_v23 = vld [vmem:[%s1815_s8] ss:$0 sm:$0xff] }
 0x381   : > { %1440 = vmatpush3.bf16.msra.mxu0 %v827_v24 }
 0x382   : > { %1451 = vmatprep.subr.bf16.mxu0 %v1547_v1 }
 0x384   : > { %1442 = vmatmul.mubr.msk.bf16.vlgmr.msra.gmra.mxu0 %vm540_vm2, %v820_v26 }
 0x385   : > { %1452 = vmatpush3.bf16.msra.mxu0 %v937_v27  ;;  %1453 = vmatprep.mubr.msk.bf16.mxu0 %vm1548_vm0, %v1547_v1 }
 0x386   : > { %1465 = vmatprep.subr.bf16.mxu0 %v1547_v1 }
 0x389   : > { %v1534_v28 = vpop.eup %1533 }
 0x38a   : > { %v929_v29 = vmul.f32 %v1534_v28, %v1526_v5 }
 0x38c   : > { %v930_v30 = vpack.c.bf16 %v929_v29, %v929_v29 }
 0x38e   : > { %1454 = vmatmul.mubr.msk.bf16.vlgmr.msra.gmra.mxu0 %vm540_vm2, %v930_v30 }
 0x38f   : > { %1469 = vmatprep.mubr.msk.bf16.mxu0 %vm1548_vm0, %v1547_v1  ;;  %1466 = vmatpush3.bf16.msra.mxu0 %v1513_v3 }
 0x390   : > { %1467 = vmatprep.subr.bf16.mxu0 %v1547_v1 }
 0x393   : > { %1468 = vmatpush3.bf16.msra.mxu0 %v1514_v8 }
 0x417   : > { %v642_v31 = vpop.f32.mrf.mxu0 }
 0x419   : > { %v1419_v32 = vpop.f32.mrf.mxu0 }
 0x41b   : > { %v645_v33 = vpop.f32.mrf.mxu0 }
 0x41d   : > { %v1420_v34 = vpop.f32.mrf.mxu0 }
 0x41f   : > { %v753_v35 = vpop.f32.mrf.mxu0 }
 0x420   : > { %980 = vrot.lane.b32.xlu1 %v753_v35, %s1560_s25 }
 0x421   : > { %v1431_v36 = vpop.f32.mrf.mxu0 }
 0x423   : > { %v756_v37 = vpop.f32.mrf.mxu0 }
 0x425   : > { %v1432_v38 = vpop.f32.mrf.mxu0 }
 0x444   : > { %v863_v41 = vpop.f32.mrf.mxu0 }
 0x445   : > { %984 = vrot.lane.b32.xlu0 %v863_v41, %s1561_s16 }
 0x446   : > { %v1443_v42 = vpop.f32.mrf.mxu0 }
 0x448   : > { %v866_v43 = vpop.f32.mrf.mxu0 }
 0x44a   : > { %v1444_v44 = vpop.f32.mrf.mxu0 }
 0x44e   : > { %v973_v45 = vpop.f32.mrf.mxu0 }
 0x44f   : > { %988 = vrot.lane.b32.xlu1 %v973_v45, %s1562_s17 }
 0x450   : > { %v1455_v46 = vpop.f32.mrf.mxu0 }
 0x452   : > { %v976_v47 = vpop.f32.mrf.mxu0 }
 0x453   : > { %v1367_v47 = vld [vmem:[%s1818_s11] ss:$0 sm:$0xff] }
 0x454   : > { %v1456_v48 = vpop.f32.mrf.mxu0 }
 0x492   : > { %v981_v49 = vpop.permute.xlu1 %980 }
 0x493   : > { %v991_v51 = vsel %vm540_vm2, %v642_v31, %v981_v49  ;;  %v1368_v49 = vld [vmem:[%s1819_s12] ss:$0 sm:$0xff] }
 0x4b7   : > { %v985_v50 = vpop.permute.xlu0 %984 }
 0x4b8   : > { %v993_v52 = vsel %vm992_vm4, %v991_v51, %v985_v50 }
 0x4c1   : > { %v989_v53 = vpop.permute.xlu1 %988 }
 0x4c2   : > { %v995_v54 = vsel %vm994_vm5, %v993_v52, %v989_v53 }
 0x4c3   : > { %v996_v55 = vpack.c.bf16 %v995_v54, %v995_v54 }
 0x4c5   : > { %1462 = vmatmul.mubr.msk.bf16.vlgmr.msra.gmra.mxu1 %vm490_vm1, %v996_v55 }
 0x4c6   : > { %1481 = vmatprep.mubr.msk.bf16.mxu1 %vm1548_vm0, %v1547_v1  ;;  %1474 = vmatpush3.bf16.msra.mxu1 %v1515_v10 }
 0x4c7   : > { %1475 = vmatprep.subr.bf16.mxu1 %v1547_v1 }
 0x4ca   : > { %1476 = vmatpush3.bf16.msra.mxu1 %v1516_v11 }
 0x4cb   : > { %1477 = vmatprep.subr.bf16.mxu1 %v1547_v1 }
 0x4ce   : > { %1478 = vmatpush3.bf16.msra.mxu1 %v1517_v21 }
 0x4cf   : > { %1479 = vmatprep.subr.bf16.mxu1 %v1547_v1  ;;  %v1361_v1 = vld [vmem:[%s1817_s10] ss:$0 sm:$0xff] }
 0x4d2   : > { %1480 = vmatpush3.bf16.msra.mxu1 %v1518_v22 }
 0x585   : > { %v1057_v58 = vpop.f32.mrf.mxu1 }
 0x586   : > { %v1058_v59 = vadd.f32 %v1351_v56, %v1057_v58 }
 0x587   : > { %v1463_v60 = vpop.f32.mrf.mxu1 }
 0x588   : > { %v1063_v61 = vadd.f32 %v1058_v59, %v465_v57 }
 0x589   : > { %v1060_v62 = vpop.f32.mrf.mxu1 }
 0x58a   : > { %v1064_v63 = vsel %vm490_vm1, %v1063_v61, 0.0 }
 0x58b   : > { %v1464_v0 = vpop.f32.mrf.mxu1  ;;  %1065 = vadd.xlane.f32.xlu0 %v1064_v63 }
 0x614   : > { %v1066_v2 = vpop.xlane.xlu0 %1065 }
 0x615   : > { %v1068_v4 = vmul.f32 0.03125, %v1066_v2 }
 0x617   : > { %v1069_v5 = vsub.f32 %v1063_v61, %v1068_v4 }
 0x619   : > { %v1070_v6 = vmul.f32 %v1069_v5, %v1069_v5 }
 0x61b   : > { %v1071_v7 = vsel %vm490_vm1, %v1070_v6, 0.0 }
 0x61c   : > { %1072 = vadd.xlane.f32.xlu1 %v1071_v7 }
 0x6a5   : > { %v1073_v12 = vpop.xlane.xlu1 %1072 }
 0x6a6   : > { %v1074_v13 = vmul.f32 0.03125, %v1073_v12 }
 0x6a8   : > { %v1075_v14 = vadd.f32 1e-05, %v1074_v13 }
 0x6aa   : > { %1535 = vrsqrt.f32 %v1075_v14 }
 0x6b7   : > { %v1536_v15 = vpop.eup %1535 }
 0x6b8   : > { %v1077_v17 = vmul.f32 %v1536_v15, %v1069_v5 }
 0x6ba   : > { %v1085_v9 = vmul.f32 %v1355_v16, %v1077_v17 }
 0x6bc   : > { %v1093_v19 = vadd.f32 %v1356_v18, %v1085_v9 }
 0x6be   : > { %v1094_v20 = vpack.c.bf16 %v1093_v19, %v1093_v19 }
 0x6c0   : > { %1470 = vmatmul.mubr.msk.bf16.vlgmr.msra.gmra.mxu0 %vm490_vm1, %v1094_v20 }
 0x780   : > { %v1155_v24 = vpop.f32.mrf.mxu0 }
 0x781   : > { %v1156_v25 = vadd.f32 %v1357_v23, %v1155_v24 }
 0x782   : > { %v1471_v26 = vpop.f32.mrf.mxu0 }
 0x783   : > { %v1161_v27 = vmax.f32 %v1156_v25, 0.0 }
 0x784   : > { %v1158_v28 = vpop.f32.mrf.mxu0 }
 0x785   : > { %v1162_v29 = vpack.c.bf16 %v1161_v27, %v1161_v27 }
 0x786   : > { %v1472_v30 = vpop.f32.mrf.mxu0 }
 0x787   : > { %1482 = vmatmul.mubr.msk.bf16.vlgmr.msra.gmra.mxu1 %vm1202_vm6, %v1162_v29 }
 0x847   : > { %v1240_v31 = vpop.f32.mrf.mxu1 }
 0x848   : > { %v1241_v32 = vadd.f32 %v1361_v1, %v1240_v31 }
 0x849   : > { %v1483_v33 = vpop.f32.mrf.mxu1 }
 0x84a   : > { %v1246_v34 = vadd.f32 %v1241_v32, %v1093_v19 }
 0x84b   : > { %v1243_v35 = vpop.f32.mrf.mxu1 }
 0x84c   : > { %v1247_v36 = vsel %vm490_vm1, %v1246_v34, 0.0 }
 0x84d   : > { %1248 = vadd.xlane.f32.xlu0 %v1247_v36  ;;  %v1484_v37 = vpop.f32.mrf.mxu1 }
 0x8d6   : > { %v1249_v38 = vpop.xlane.xlu0 %1248 }
 0x8d7   : > { %v1250_v39 = vmul.f32 0.03125, %v1249_v38 }
 0x8d9   : > { %v1251_v40 = vsub.f32 %v1246_v34, %v1250_v39 }
 0x8db   : > { %v1252_v41 = vmul.f32 %v1251_v40, %v1251_v40 }
 0x8dd   : > { %v1253_v42 = vsel %vm490_vm1, %v1252_v41, 0.0 }
 0x8de   : > { %1254 = vadd.xlane.f32.xlu0 %v1253_v42 }
 0x967   : > { %v1255_v43 = vpop.xlane.xlu0 %1254 }
 0x968   : > { %v1256_v44 = vmul.f32 0.03125, %v1255_v43 }
 0x96a   : > { %v1257_v45 = vadd.f32 1e-05, %v1256_v44 }
 0x96c   : > { %1537 = vrsqrt.f32 %v1257_v45 }
 0x979   : > { %v1538_v46 = vpop.eup %1537 }
 0x97a   : > { %v1259_v48 = vmul.f32 %v1538_v46, %v1251_v40 }
 0x97c   : > { %v1267_v50 = vmul.f32 %v1367_v47, %v1259_v48 }
 0x97e   : > { %v1275_v51 = vadd.f32 %v1368_v49, %v1267_v50 }
 0x980   : > { %v1276_v52 = vpack.c.bf16 %v1275_v51, %v1275_v51 }
 0x982   : > { %1278 = vst.msk [vmem:[%s462_s21] sm:$0xf] %vm1277_vm7, %v1276_v52 }
 0x983 PF: > { %s24_s29 = sadd.s32 1, %s1545_s29  }
 0x984   : > { %p21_p4 = scmp.ge.s32.totalorder %s24_s29, 4  }
 0x986   :  { %23 = sbr.rel (!%p21_p4) target bundleno = 1 (0x1), region = 106 }

</bundles_post_ra>
